<compile_context>
chip_gen: v7x
topology: tpu7x:2x2x1
jax: 0.10.0
libtpu: 0.0.40
codegen_flags: <defaults>
</compile_context>

<pallas_src>
import math
from functools import partial

import jax
import jax.numpy as jnp
from jax.experimental import pallas as pl
from jax.experimental.pallas import tpu as pltpu


# ---------------------------------------------------------------------------
# In-kernel math helpers (elementwise, VPU/EUP-only -> guaranteed to lower)
# ---------------------------------------------------------------------------

# XLA's f32 erf rational polynomial, so exact (erf-based) nn.GELU semantics are
# reproduced without relying on an erf lowering inside Mosaic.
_ERF_ALPHA = (
    -2.72614225801306e-10, 2.77068142495902e-08, -2.10102402082508e-06,
    -5.69250639462346e-05, -7.34990630326855e-04, -2.95459980854025e-03,
    -1.60960333262415e-02,
)
_ERF_BETA = (
    -1.45660718464996e-05, -2.13374055278905e-04, -1.68282697438203e-03,
    -7.37332916720468e-03, -1.42647390514189e-02,
)


def _erf(x):
    x = jnp.clip(x, -4.0, 4.0)
    x2 = x * x
    p = jnp.full_like(x2, _ERF_ALPHA[0])
    for c in _ERF_ALPHA[1:]:
        p = p * x2 + c
    q = jnp.full_like(x2, _ERF_BETA[0])
    for c in _ERF_BETA[1:]:
        q = q * x2 + c
    return x * p / q


def _gelu(x):
    # exact GELU: 0.5 * x * (1 + erf(x / sqrt(2)))  (PyTorch nn.GELU default)
    return 0.5 * x * (1.0 + _erf(x * 0.7071067811865476))


def _layernorm(x, g, b, eps=1e-5):
    mu = jnp.mean(x, axis=-1, keepdims=True)
    xc = x - mu
    var = jnp.mean(xc * xc, axis=-1, keepdims=True)
    return xc * jax.lax.rsqrt(var + eps) * g + b


# ---------------------------------------------------------------------------
# Fused encoder-layer kernel (a chunk of batches per grid step)
# ---------------------------------------------------------------------------

def _encoder_layer_kernel(x_ref, wqkv_ref, wo_ref, w1_ref, w2_ref, vec_ref,
                          o_ref, *, nhead):
    f32 = jnp.float32
    bf16 = jnp.bfloat16

    Bt, S, D = x_ref.shape
    F = w1_ref.shape[1]
    H = nhead
    hd = D // H
    N = Bt * S          # rows of tokens in this grid step
    G = H * Bt          # flat (head, batch) attention groups

    x = x_ref[...].reshape(N, D)          # (N, D) f32 (free leading-dim merge)

    # Packed small vectors: row 0 b_qkv(3D), 1 b_out(D), 2 b1(F), 3 b2(D),
    # 4 g1(D), 5 be1(D), 6 g2(D), 7 be2(D).
    vec = vec_ref[...]
    b_qkv = vec[0:1, :3 * D]
    b_out = vec[1:2, :D]
    b1 = vec[2:3, :F]
    b2 = vec[3:4, :D]
    g1 = vec[4:5, :D]
    be1 = vec[5:6, :D]
    g2 = vec[6:7, :D]
    be2 = vec[7:8, :D]

    # ---- pre-norm 1 + fused QKV projection: one (N,D)@(D,3D) bf16 matmul ----
    y = _layernorm(x, g1, be1)                                        # (N, D) f32
    qkv = jnp.dot(y.astype(bf16), wqkv_ref[...],
                  preferred_element_type=f32) + b_qkv                 # (N, 3D) f32

    def split_heads(col0):
        # columns [col0 : col0+D] of qkv -> (H*Bt, S, hd), group g = h*Bt + b.
        parts = [qkv[:, col0 + h * hd: col0 + (h + 1) * hd].reshape(Bt, S, hd)
                 for h in range(H)]
        return jnp.concatenate(parts, axis=0).astype(bf16)            # (G, S, hd)

    q = split_heads(0)          # 1/sqrt(hd) folded into wqkv / b_qkv in wrapper
    k = split_heads(D)
    v = split_heads(2 * D)

    # ---- scaled dot-product attention, all (head, batch) groups batched ----
    s = jnp.einsum('gqe,gke->gqk', q, k,
                   preferred_element_type=jnp.float32)                # (G, S, S)
    s = s - jnp.max(s, axis=-1, keepdims=True)
    p = jnp.exp(s)
    p = (p * pl.reciprocal(jnp.sum(p, axis=-1, keepdims=True),
                           approx=True)).astype(bf16)

    ctx = jnp.einsum('gqk,gke->gqe', p, v,
                     preferred_element_type=jnp.float32)              # (G, S, hd)

    # One (H,Bt,S,hd) -> (N, H*hd) relayout, then a single (N,D)@(D,D) out-proj.
    ctx = ctx.reshape(H, Bt, S, hd)
    ctx_rows = jnp.concatenate([ctx[h] for h in range(H)], axis=-1)   # (Bt, S, D)
    ctx_rows = ctx_rows.reshape(N, D)

    attn = jnp.dot(ctx_rows.astype(bf16), wo_ref[...],
                   preferred_element_type=f32) + b_out                # (N, D)

    x1 = x + attn                                                     # residual 1

    # ---- pre-norm 2 + exact-GELU FFN ----
    y2 = _layernorm(x1, g2, be2)
    h1 = jnp.dot(y2.astype(bf16), w1_ref[...],
                 preferred_element_type=f32) + b1                     # (N, F)
    h1 = _gelu(h1)
    h2 = jnp.dot(h1.astype(bf16), w2_ref[...],
                 preferred_element_type=f32) + b2                     # (N, D)

    o_ref[...] = (x1 + h2).reshape(Bt, S, D)                          # residual 2


# ---------------------------------------------------------------------------
# Wrapper
# ---------------------------------------------------------------------------

def transformer_encoder_layer(src, params, nhead, batch_block=None):
    """src: (S, B, D) float32, returns (S, B, D) float32."""
    S, B, D = src.shape
    H = nhead
    hd = D // H
    F = params["w1"].shape[0]
    scale = 1.0 / math.sqrt(hd)
    bf16, f32 = jnp.bfloat16, jnp.float32

    # (S, B, D) -> (B, S, D): per-step blocks then carry full trailing (S, D).
    x = jnp.transpose(src, (1, 0, 2)).astype(f32)

    # Fused QKV weight slab (D, 3D) with the q-scale folded in.
    qscale = jnp.concatenate([jnp.full((D,), scale, f32), jnp.ones((2 * D,), f32)])
    w_qkv = (params["w_in"] * qscale[:, None]).T.astype(bf16)         # (D, 3D)
    b_qkv = (params["b_in"] * qscale).astype(f32)                     # (3D,)
    w_o = params["w_out"].T.astype(bf16)                              # (D, D)
    w_1 = params["w1"].T.astype(bf16)                                 # (D, F)
    w_2 = params["w2"].T.astype(bf16)                                 # (F, D)

    # Pack the 8 small bias / LayerNorm vectors into one resident operand.
    rows = [b_qkv, params["b_out"], params["b1"], params["b2"],
            params["g1"], params["be1"], params["g2"], params["be2"]]
    row_len = ((max(int(r.shape[0]) for r in rows) + 127) // 128) * 128
    vec = jnp.zeros((len(rows), row_len), f32)
    for i, r in enumerate(rows):
        vec = vec.at[i, :r.shape[0]].set(r.astype(f32))

    # Batch tiling: one grid step for small B (single-TC v5e/v6e: grid is a
    # serial loop); two parallel chunks once there is enough per-TC work for
    # both v7x TensorCores.
    if batch_block is None:
        batch_block = B if B < 8 else -(-B // 2)
    if B % batch_block != 0:
        batch_block = B
    grid = (B // batch_block,)

    def _resident(shape):
        # Constant index_map -> fetched once, VMEM-resident across grid steps.
        nd = len(shape)
        return pl.BlockSpec(shape, lambda b, _nd=nd: (0,) * _nd)

    in_specs = [pl.BlockSpec((batch_block, S, D), lambda b: (b, 0, 0)),
                _resident(w_qkv.shape), _resident(w_o.shape),
                _resident(w_1.shape), _resident(w_2.shape),
                _resident(vec.shape)]

    out = pl.pallas_call(
        partial(_encoder_layer_kernel, nhead=H),
        out_shape=jax.ShapeDtypeStruct((B, S, D), f32),
        grid=grid,
        in_specs=in_specs,
        out_specs=pl.BlockSpec((batch_block, S, D), lambda b: (b, 0, 0)),
        compiler_params=pltpu.CompilerParams(
            dimension_semantics=("parallel",),     # shards batch chunks on v7x
            vmem_limit_bytes=32 * 1024 * 1024,
        ),
    )(x, w_qkv, w_o, w_1, w_2, vec)

    return out.transpose(1, 0, 2)


# ---------------------------------------------------------------------------
# Pure-JAX f32 reference (PyTorch semantics, used only for the sanity check)
# ---------------------------------------------------------------------------

def reference(src, params, nhead):
    S, B, D = src.shape
    hd = D // nhead

    def ln(x, g, b):
        mu = x.mean(-1, keepdims=True)
        var = ((x - mu) ** 2).mean(-1, keepdims=True)
        return (x - mu) / jnp.sqrt(var + 1e-5) * g + b

    x = src
    y = ln(x, params["g1"], params["be1"])
    qkv = y @ params["w_in"].T + params["b_in"]                 # (S, B, 3D)
    q, k, v = jnp.split(qkv, 3, axis=-1)

    def to_heads(t):
        return t.transpose(1, 0, 2).reshape(B, S, nhead, hd).transpose(0, 2, 1, 3)

    qh, kh, vh = map(to_heads, (q, k, v))
    s = jnp.einsum("bhqd,bhkd->bhqk", qh, kh) / math.sqrt(hd)
    p = jax.nn.softmax(s, axis=-1)
    o = jnp.einsum("bhqk,bhkd->bhqd", p, vh)
    o = o.transpose(2, 0, 1, 3).reshape(S, B, D)
    attn = o @ params["w_out"].T + params["b_out"]
    x = x + attn
    y2 = ln(x, params["g2"], params["be2"])
    h = jax.nn.gelu(y2 @ params["w1"].T + params["b1"], approximate=False)
    h = h @ params["w2"].T + params["b2"]
    return x + h


# ---------------------------------------------------------------------------
# Main
# ---------------------------------------------------------------------------

if __name__ == "__main__":
    S, B, D, H, F = 8, 2, 32, 4, 64   # seq, batch, d_model, nhead, dim_feedforward

    key = jax.random.PRNGKey(0)
    ks = jax.random.split(key, 16)

    params = {
        "w_in":  0.05 * jax.random.normal(ks[0], (3 * D, D), jnp.float32),
        "b_in":  0.05 * jax.random.normal(ks[1], (3 * D,),   jnp.float32),
        "w_out": 0.05 * jax.random.normal(ks[2], (D, D),     jnp.float32),
        "b_out": 0.05 * jax.random.normal(ks[3], (D,),       jnp.float32),
        "w1":    0.05 * jax.random.normal(ks[4], (F, D),     jnp.float32),
        "b1":    0.05 * jax.random.normal(ks[5], (F,),       jnp.float32),
        "w2":    0.05 * jax.random.normal(ks[6], (D, F),     jnp.float32),
        "b2":    0.05 * jax.random.normal(ks[7], (D,),       jnp.float32),
        "g1":    1.0 + 0.1 * jax.random.normal(ks[8],  (D,), jnp.float32),
        "be1":   0.1 * jax.random.normal(ks[9],  (D,),       jnp.float32),
        "g2":    1.0 + 0.1 * jax.random.normal(ks[10], (D,), jnp.float32),
        "be2":   0.1 * jax.random.normal(ks[11], (D,),       jnp.float32),
    }

    src = jax.random.normal(ks[12], (S, B, D), jnp.float32)

    out = jax.block_until_ready(transformer_encoder_layer(src, params, nhead=H))
    ref = jax.block_until_ready(reference(src, params, nhead=H))

    max_err = float(jnp.max(jnp.abs(out - ref)))
    # bf16 matmul inputs with f32 accumulation: expected max abs error ~1e-3.
    if not (out.shape == (S, B, D) and max_err < 2e-2):
        raise AssertionError(f"mismatch vs reference: max_err={max_err}")

    print("KERNEL_OK")
</pallas_src>

<mosaic_0001>
module attributes {stable_mosaic.version = 11 : i64} {
  func.func @_encoder_layer_kernel(%arg0: i32, %arg1: memref<2x8x32xf32, #tpu.memory_space<vmem>>, %arg2: memref<32x96xbf16, #tpu.memory_space<vmem>>, %arg3: memref<32x32xbf16, #tpu.memory_space<vmem>>, %arg4: memref<32x64xbf16, #tpu.memory_space<vmem>>, %arg5: memref<64x32xbf16, #tpu.memory_space<vmem>>, %arg6: memref<8x128xf32, #tpu.memory_space<vmem>>, %arg7: memref<2x8x32xf32, #tpu.memory_space<vmem>>) attributes {dimension_semantics = [#tpu.dimension_semantics<parallel>], iteration_bounds = array<i64: 1>, scalar_prefetch = 0 : i64, scratch_operands = 0 : i64, tpu.core_type = #tpu.core_type<tc>, window_params = [{transform_indices = @transform_0, window_bounds = array<i64: 2, 8, 32>}, {pipeline_mode = #tpu.pipeline_mode<synchronous>, transform_indices = @transform_1, window_bounds = array<i64: 32, 96>}, {pipeline_mode = #tpu.pipeline_mode<synchronous>, transform_indices = @transform_2, window_bounds = array<i64: 32, 32>}, {pipeline_mode = #tpu.pipeline_mode<synchronous>, transform_indices = @transform_3, window_bounds = array<i64: 32, 64>}, {pipeline_mode = #tpu.pipeline_mode<synchronous>, transform_indices = @transform_4, window_bounds = array<i64: 64, 32>}, {pipeline_mode = #tpu.pipeline_mode<synchronous>, transform_indices = @transform_5, window_bounds = array<i64: 8, 128>}, {transform_indices = @transform_6, window_bounds = array<i64: 2, 8, 32>}]} {
    %c0 = arith.constant 0 : index
    %c0_0 = arith.constant 0 : index
    %c0_1 = arith.constant 0 : index
    %0 = vector.load %arg1[%c0, %c0_0, %c0_1] : memref<2x8x32xf32, #tpu.memory_space<vmem>>, vector<2x8x32xf32>
    %1 = vector.shape_cast %0 : vector<2x8x32xf32> to vector<16x32xf32>
    %c0_2 = arith.constant 0 : index
    %c0_3 = arith.constant 0 : index
    %2 = vector.load %arg6[%c0_2, %c0_3] : memref<8x128xf32, #tpu.memory_space<vmem>>, vector<8x128xf32>
    %3 = vector.extract_strided_slice %2 {offsets = [0, 0], sizes = [1, 96], strides = [1, 1]} : vector<8x128xf32> to vector<1x96xf32>
    %4 = vector.extract_strided_slice %2 {offsets = [1, 0], sizes = [1, 32], strides = [1, 1]} : vector<8x128xf32> to vector<1x32xf32>
    %5 = vector.extract_strided_slice %2 {offsets = [2, 0], sizes = [1, 64], strides = [1, 1]} : vector<8x128xf32> to vector<1x64xf32>
    %6 = vector.extract_strided_slice %2 {offsets = [3, 0], sizes = [1, 32], strides = [1, 1]} : vector<8x128xf32> to vector<1x32xf32>
    %7 = vector.extract_strided_slice %2 {offsets = [4, 0], sizes = [1, 32], strides = [1, 1]} : vector<8x128xf32> to vector<1x32xf32>
    %8 = vector.extract_strided_slice %2 {offsets = [5, 0], sizes = [1, 32], strides = [1, 1]} : vector<8x128xf32> to vector<1x32xf32>
    %9 = vector.extract_strided_slice %2 {offsets = [6, 0], sizes = [1, 32], strides = [1, 1]} : vector<8x128xf32> to vector<1x32xf32>
    %10 = vector.extract_strided_slice %2 {offsets = [7, 0], sizes = [1, 32], strides = [1, 1]} : vector<8x128xf32> to vector<1x32xf32>
    %cst = arith.constant dense<0.000000e+00> : vector<16xf32>
    %11 = vector.multi_reduction <add>, %1, %cst [1] : vector<16x32xf32> to vector<16xf32>
    %12 = vector.shape_cast %11 : vector<16xf32> to vector<16x1xf32>
    %cst_4 = arith.constant 3.200000e+01 : f32
    %13 = vector.broadcast %cst_4 : f32 to vector<16x1xf32>
    %14 = arith.divf %12, %13 : vector<16x1xf32>
    %15 = vector.broadcast %14 : vector<16x1xf32> to vector<16x32xf32>
    %16 = arith.subf %1, %15 : vector<16x32xf32>
    %17 = arith.mulf %16, %16 : vector<16x32xf32>
    %cst_5 = arith.constant dense<0.000000e+00> : vector<16xf32>
    %18 = vector.multi_reduction <add>, %17, %cst_5 [1] : vector<16x32xf32> to vector<16xf32>
    %19 = vector.shape_cast %18 : vector<16xf32> to vector<16x1xf32>
    %cst_6 = arith.constant 3.200000e+01 : f32
    %20 = vector.broadcast %cst_6 : f32 to vector<16x1xf32>
    %21 = arith.divf %19, %20 : vector<16x1xf32>
    %cst_7 = arith.constant 9.99999974E-6 : f32
    %22 = vector.broadcast %cst_7 : f32 to vector<16x1xf32>
    %23 = arith.addf %21, %22 : vector<16x1xf32>
    %24 = math.rsqrt %23 : vector<16x1xf32>
    %25 = vector.broadcast %24 : vector<16x1xf32> to vector<16x32xf32>
    %26 = arith.mulf %16, %25 : vector<16x32xf32>
    %27 = vector.broadcast %7 : vector<1x32xf32> to vector<16x32xf32>
    %28 = arith.mulf %26, %27 : vector<16x32xf32>
    %29 = vector.broadcast %8 : vector<1x32xf32> to vector<16x32xf32>
    %30 = arith.addf %28, %29 : vector<16x32xf32>
    %31 = arith.truncf %30 : vector<16x32xf32> to vector<16x32xbf16>
    %c0_8 = arith.constant 0 : index
    %c0_9 = arith.constant 0 : index
    %32 = vector.load %arg2[%c0_8, %c0_9] : memref<32x96xbf16, #tpu.memory_space<vmem>>, vector<32x96xbf16>
    %cst_10 = arith.constant dense<0.000000e+00> : vector<16x96xf32>
    %33 = tpu.matmul %31, %32, %cst_10 {dimension_numbers = #tpu.dot_dimension_numbers<[1], [0], [0], [1], [0, 0, 1, 1], [], []>} : vector<16x32xbf16>, vector<32x96xbf16>, vector<16x96xf32> -> vector<16x96xf32>
    %34 = vector.broadcast %3 : vector<1x96xf32> to vector<16x96xf32>
    %35 = arith.addf %33, %34 : vector<16x96xf32>
    %36 = vector.extract_strided_slice %35 {offsets = [0, 0], sizes = [16, 8], strides = [1, 1]} : vector<16x96xf32> to vector<16x8xf32>
    %37 = vector.shape_cast %36 : vector<16x8xf32> to vector<2x8x8xf32>
    %38 = vector.extract_strided_slice %35 {offsets = [0, 8], sizes = [16, 8], strides = [1, 1]} : vector<16x96xf32> to vector<16x8xf32>
    %39 = vector.shape_cast %38 : vector<16x8xf32> to vector<2x8x8xf32>
    %40 = vector.extract_strided_slice %35 {offsets = [0, 16], sizes = [16, 8], strides = [1, 1]} : vector<16x96xf32> to vector<16x8xf32>
    %41 = vector.shape_cast %40 : vector<16x8xf32> to vector<2x8x8xf32>
    %42 = vector.extract_strided_slice %35 {offsets = [0, 24], sizes = [16, 8], strides = [1, 1]} : vector<16x96xf32> to vector<16x8xf32>
    %43 = vector.shape_cast %42 : vector<16x8xf32> to vector<2x8x8xf32>
    %44 = tpu.concatenate %37, %39, %41, %43 in 0 : vector<2x8x8xf32>, vector<2x8x8xf32>, vector<2x8x8xf32>, vector<2x8x8xf32> -> vector<8x8x8xf32>
    %45 = arith.truncf %44 : vector<8x8x8xf32> to vector<8x8x8xbf16>
    %46 = vector.extract_strided_slice %35 {offsets = [0, 32], sizes = [16, 8], strides = [1, 1]} : vector<16x96xf32> to vector<16x8xf32>
    %47 = vector.shape_cast %46 : vector<16x8xf32> to vector<2x8x8xf32>
    %48 = vector.extract_strided_slice %35 {offsets = [0, 40], sizes = [16, 8], strides = [1, 1]} : vector<16x96xf32> to vector<16x8xf32>
    %49 = vector.shape_cast %48 : vector<16x8xf32> to vector<2x8x8xf32>
    %50 = vector.extract_strided_slice %35 {offsets = [0, 48], sizes = [16, 8], strides = [1, 1]} : vector<16x96xf32> to vector<16x8xf32>
    %51 = vector.shape_cast %50 : vector<16x8xf32> to vector<2x8x8xf32>
    %52 = vector.extract_strided_slice %35 {offsets = [0, 56], sizes = [16, 8], strides = [1, 1]} : vector<16x96xf32> to vector<16x8xf32>
    %53 = vector.shape_cast %52 : vector<16x8xf32> to vector<2x8x8xf32>
    %54 = tpu.concatenate %47, %49, %51, %53 in 0 : vector<2x8x8xf32>, vector<2x8x8xf32>, vector<2x8x8xf32>, vector<2x8x8xf32> -> vector<8x8x8xf32>
    %55 = arith.truncf %54 : vector<8x8x8xf32> to vector<8x8x8xbf16>
    %56 = vector.extract_strided_slice %35 {offsets = [0, 64], sizes = [16, 8], strides = [1, 1]} : vector<16x96xf32> to vector<16x8xf32>
    %57 = vector.shape_cast %56 : vector<16x8xf32> to vector<2x8x8xf32>
    %58 = vector.extract_strided_slice %35 {offsets = [0, 72], sizes = [16, 8], strides = [1, 1]} : vector<16x96xf32> to vector<16x8xf32>
    %59 = vector.shape_cast %58 : vector<16x8xf32> to vector<2x8x8xf32>
    %60 = vector.extract_strided_slice %35 {offsets = [0, 80], sizes = [16, 8], strides = [1, 1]} : vector<16x96xf32> to vector<16x8xf32>
    %61 = vector.shape_cast %60 : vector<16x8xf32> to vector<2x8x8xf32>
    %62 = vector.extract_strided_slice %35 {offsets = [0, 88], sizes = [16, 8], strides = [1, 1]} : vector<16x96xf32> to vector<16x8xf32>
    %63 = vector.shape_cast %62 : vector<16x8xf32> to vector<2x8x8xf32>
    %64 = tpu.concatenate %57, %59, %61, %63 in 0 : vector<2x8x8xf32>, vector<2x8x8xf32>, vector<2x8x8xf32>, vector<2x8x8xf32> -> vector<8x8x8xf32>
    %65 = arith.truncf %64 : vector<8x8x8xf32> to vector<8x8x8xbf16>
    "tpu.trace_start"() <{level = 10 : i32, message = "gqe,gke->gqk"}> : () -> ()
    %cst_11 = arith.constant dense<0.000000e+00> : vector<8x8x8xf32>
    %66 = tpu.matmul %45, %55, %cst_11 {dimension_numbers = #tpu.dot_dimension_numbers<[2], [2], [1], [1], [0, 0, 0, 1, 1, 1], [0], [0]>} : vector<8x8x8xbf16>, vector<8x8x8xbf16>, vector<8x8x8xf32> -> vector<8x8x8xf32>
    "tpu.trace_stop"() : () -> ()
    %cst_12 = arith.constant dense<0xFF800000> : vector<8x8xf32>
    %67 = vector.multi_reduction <maximumf>, %66, %cst_12 [2] : vector<8x8x8xf32> to vector<8x8xf32>
    %68 = vector.shape_cast %67 : vector<8x8xf32> to vector<8x8x1xf32>
    %69 = vector.broadcast %68 : vector<8x8x1xf32> to vector<8x8x8xf32>
    %70 = arith.subf %66, %69 : vector<8x8x8xf32>
    %71 = math.exp %70 : vector<8x8x8xf32>
    %cst_13 = arith.constant dense<0.000000e+00> : vector<8x8xf32>
    %72 = vector.multi_reduction <add>, %71, %cst_13 [2] : vector<8x8x8xf32> to vector<8x8xf32>
    %73 = vector.shape_cast %72 : vector<8x8xf32> to vector<8x8x1xf32>
    %74 = tpu.reciprocal %73 {approx = true} : vector<8x8x1xf32> -> vector<8x8x1xf32>
    %75 = vector.broadcast %74 : vector<8x8x1xf32> to vector<8x8x8xf32>
    %76 = arith.mulf %71, %75 : vector<8x8x8xf32>
    %77 = arith.truncf %76 : vector<8x8x8xf32> to vector<8x8x8xbf16>
    "tpu.trace_start"() <{level = 10 : i32, message = "gqk,gke->gqe"}> : () -> ()
    %cst_14 = arith.constant dense<0.000000e+00> : vector<8x8x8xf32>
    %78 = tpu.matmul %77, %65, %cst_14 {dimension_numbers = #tpu.dot_dimension_numbers<[2], [1], [1], [2], [0, 0, 0, 1, 1, 2], [0], [0]>} : vector<8x8x8xbf16>, vector<8x8x8xbf16>, vector<8x8x8xf32> -> vector<8x8x8xf32>
    "tpu.trace_stop"() : () -> ()
    %79 = vector.shape_cast %78 : vector<8x8x8xf32> to vector<4x2x8x8xf32>
    %80 = vector.extract_strided_slice %79 {offsets = [0, 0, 0, 0], sizes = [1, 2, 8, 8], strides = [1, 1, 1, 1]} : vector<4x2x8x8xf32> to vector<1x2x8x8xf32>
    %81 = vector.shape_cast %80 : vector<1x2x8x8xf32> to vector<2x8x8xf32>
    %82 = vector.extract_strided_slice %79 {offsets = [1, 0, 0, 0], sizes = [1, 2, 8, 8], strides = [1, 1, 1, 1]} : vector<4x2x8x8xf32> to vector<1x2x8x8xf32>
    %83 = vector.shape_cast %82 : vector<1x2x8x8xf32> to vector<2x8x8xf32>
    %84 = vector.extract_strided_slice %79 {offsets = [2, 0, 0, 0], sizes = [1, 2, 8, 8], strides = [1, 1, 1, 1]} : vector<4x2x8x8xf32> to vector<1x2x8x8xf32>
    %85 = vector.shape_cast %84 : vector<1x2x8x8xf32> to vector<2x8x8xf32>
    %86 = vector.extract_strided_slice %79 {offsets = [3, 0, 0, 0], sizes = [1, 2, 8, 8], strides = [1, 1, 1, 1]} : vector<4x2x8x8xf32> to vector<1x2x8x8xf32>
    %87 = vector.shape_cast %86 : vector<1x2x8x8xf32> to vector<2x8x8xf32>
    %88 = tpu.concatenate %81, %83, %85, %87 in 2 : vector<2x8x8xf32>, vector<2x8x8xf32>, vector<2x8x8xf32>, vector<2x8x8xf32> -> vector<2x8x32xf32>
    %89 = vector.shape_cast %88 : vector<2x8x32xf32> to vector<16x32xf32>
    %90 = arith.truncf %89 : vector<16x32xf32> to vector<16x32xbf16>
    %c0_15 = arith.constant 0 : index
    %c0_16 = arith.constant 0 : index
    %91 = vector.load %arg3[%c0_15, %c0_16] : memref<32x32xbf16, #tpu.memory_space<vmem>>, vector<32x32xbf16>
    %cst_17 = arith.constant dense<0.000000e+00> : vector<16x32xf32>
    %92 = tpu.matmul %90, %91, %cst_17 {dimension_numbers = #tpu.dot_dimension_numbers<[1], [0], [0], [1], [0, 0, 1, 1], [], []>} : vector<16x32xbf16>, vector<32x32xbf16>, vector<16x32xf32> -> vector<16x32xf32>
    %93 = vector.broadcast %4 : vector<1x32xf32> to vector<16x32xf32>
    %94 = arith.addf %92, %93 : vector<16x32xf32>
    %95 = arith.addf %1, %94 : vector<16x32xf32>
    %cst_18 = arith.constant dense<0.000000e+00> : vector<16xf32>
    %96 = vector.multi_reduction <add>, %95, %cst_18 [1] : vector<16x32xf32> to vector<16xf32>
    %97 = vector.shape_cast %96 : vector<16xf32> to vector<16x1xf32>
    %cst_19 = arith.constant 3.200000e+01 : f32
    %98 = vector.broadcast %cst_19 : f32 to vector<16x1xf32>
    %99 = arith.divf %97, %98 : vector<16x1xf32>
    %100 = vector.broadcast %99 : vector<16x1xf32> to vector<16x32xf32>
    %101 = arith.subf %95, %100 : vector<16x32xf32>
    %102 = arith.mulf %101, %101 : vector<16x32xf32>
    %cst_20 = arith.constant dense<0.000000e+00> : vector<16xf32>
    %103 = vector.multi_reduction <add>, %102, %cst_20 [1] : vector<16x32xf32> to vector<16xf32>
    %104 = vector.shape_cast %103 : vector<16xf32> to vector<16x1xf32>
    %cst_21 = arith.constant 3.200000e+01 : f32
    %105 = vector.broadcast %cst_21 : f32 to vector<16x1xf32>
    %106 = arith.divf %104, %105 : vector<16x1xf32>
    %cst_22 = arith.constant 9.99999974E-6 : f32
    %107 = vector.broadcast %cst_22 : f32 to vector<16x1xf32>
    %108 = arith.addf %106, %107 : vector<16x1xf32>
    %109 = math.rsqrt %108 : vector<16x1xf32>
    %110 = vector.broadcast %109 : vector<16x1xf32> to vector<16x32xf32>
    %111 = arith.mulf %101, %110 : vector<16x32xf32>
    %112 = vector.broadcast %9 : vector<1x32xf32> to vector<16x32xf32>
    %113 = arith.mulf %111, %112 : vector<16x32xf32>
    %114 = vector.broadcast %10 : vector<1x32xf32> to vector<16x32xf32>
    %115 = arith.addf %113, %114 : vector<16x32xf32>
    %116 = arith.truncf %115 : vector<16x32xf32> to vector<16x32xbf16>
    %c0_23 = arith.constant 0 : index
    %c0_24 = arith.constant 0 : index
    %117 = vector.load %arg4[%c0_23, %c0_24] : memref<32x64xbf16, #tpu.memory_space<vmem>>, vector<32x64xbf16>
    %cst_25 = arith.constant dense<0.000000e+00> : vector<16x64xf32>
    %118 = tpu.matmul %116, %117, %cst_25 {dimension_numbers = #tpu.dot_dimension_numbers<[1], [0], [0], [1], [0, 0, 1, 1], [], []>} : vector<16x32xbf16>, vector<32x64xbf16>, vector<16x64xf32> -> vector<16x64xf32>
    %119 = vector.broadcast %5 : vector<1x64xf32> to vector<16x64xf32>
    %120 = arith.addf %118, %119 : vector<16x64xf32>
    %cst_26 = arith.constant 5.000000e-01 : f32
    %121 = vector.broadcast %cst_26 : f32 to vector<16x64xf32>
    %122 = arith.mulf %121, %120 : vector<16x64xf32>
    %cst_27 = arith.constant 0.707106769 : f32
    %123 = vector.broadcast %cst_27 : f32 to vector<16x64xf32>
    %124 = arith.mulf %120, %123 : vector<16x64xf32>
    %cst_28 = arith.constant -4.000000e+00 : f32
    %cst_29 = arith.constant 4.000000e+00 : f32
    %125 = vector.broadcast %cst_28 : f32 to vector<16x64xf32>
    %126 = arith.maximumf %125, %124 : vector<16x64xf32>
    %127 = vector.broadcast %cst_29 : f32 to vector<16x64xf32>
    %128 = arith.minimumf %127, %126 : vector<16x64xf32>
    %129 = arith.mulf %128, %128 : vector<16x64xf32>
    %cst_30 = arith.constant -2.72614237E-10 : f32
    %130 = vector.broadcast %cst_30 : f32 to vector<16x64xf32>
    %131 = arith.mulf %130, %129 : vector<16x64xf32>
    %cst_31 = arith.constant 2.77068146E-8 : f32
    %132 = vector.broadcast %cst_31 : f32 to vector<16x64xf32>
    %133 = arith.addf %131, %132 : vector<16x64xf32>
    %134 = arith.mulf %133, %129 : vector<16x64xf32>
    %cst_32 = arith.constant -2.10102394E-6 : f32
    %135 = vector.broadcast %cst_32 : f32 to vector<16x64xf32>
    %136 = arith.addf %134, %135 : vector<16x64xf32>
    %137 = arith.mulf %136, %129 : vector<16x64xf32>
    %cst_33 = arith.constant -5.69250624E-5 : f32
    %138 = vector.broadcast %cst_33 : f32 to vector<16x64xf32>
    %139 = arith.addf %137, %138 : vector<16x64xf32>
    %140 = arith.mulf %139, %129 : vector<16x64xf32>
    %cst_34 = arith.constant -7.34990637E-4 : f32
    %141 = vector.broadcast %cst_34 : f32 to vector<16x64xf32>
    %142 = arith.addf %140, %141 : vector<16x64xf32>
    %143 = arith.mulf %142, %129 : vector<16x64xf32>
    %cst_35 = arith.constant -2.954600e-03 : f32
    %144 = vector.broadcast %cst_35 : f32 to vector<16x64xf32>
    %145 = arith.addf %143, %144 : vector<16x64xf32>
    %146 = arith.mulf %145, %129 : vector<16x64xf32>
    %cst_36 = arith.constant -0.0160960332 : f32
    %147 = vector.broadcast %cst_36 : f32 to vector<16x64xf32>
    %148 = arith.addf %146, %147 : vector<16x64xf32>
    %cst_37 = arith.constant -1.45660715E-5 : f32
    %149 = vector.broadcast %cst_37 : f32 to vector<16x64xf32>
    %150 = arith.mulf %149, %129 : vector<16x64xf32>
    %cst_38 = arith.constant -2.13374049E-4 : f32
    %151 = vector.broadcast %cst_38 : f32 to vector<16x64xf32>
    %152 = arith.addf %150, %151 : vector<16x64xf32>
    %153 = arith.mulf %152, %129 : vector<16x64xf32>
    %cst_39 = arith.constant -0.00168282702 : f32
    %154 = vector.broadcast %cst_39 : f32 to vector<16x64xf32>
    %155 = arith.addf %153, %154 : vector<16x64xf32>
    %156 = arith.mulf %155, %129 : vector<16x64xf32>
    %cst_40 = arith.constant -0.00737332925 : f32
    %157 = vector.broadcast %cst_40 : f32 to vector<16x64xf32>
    %158 = arith.addf %156, %157 : vector<16x64xf32>
    %159 = arith.mulf %158, %129 : vector<16x64xf32>
    %cst_41 = arith.constant -0.0142647391 : f32
    %160 = vector.broadcast %cst_41 : f32 to vector<16x64xf32>
    %161 = arith.addf %159, %160 : vector<16x64xf32>
    %162 = arith.mulf %128, %148 : vector<16x64xf32>
    %163 = arith.divf %162, %161 : vector<16x64xf32>
    %cst_42 = arith.constant 1.000000e+00 : f32
    %164 = vector.broadcast %cst_42 : f32 to vector<16x64xf32>
    %165 = arith.addf %164, %163 : vector<16x64xf32>
    %166 = arith.mulf %122, %165 : vector<16x64xf32>
    %167 = arith.truncf %166 : vector<16x64xf32> to vector<16x64xbf16>
    %c0_43 = arith.constant 0 : index
    %c0_44 = arith.constant 0 : index
    %168 = vector.load %arg5[%c0_43, %c0_44] : memref<64x32xbf16, #tpu.memory_space<vmem>>, vector<64x32xbf16>
    %cst_45 = arith.constant dense<0.000000e+00> : vector<16x32xf32>
    %169 = tpu.matmul %167, %168, %cst_45 {dimension_numbers = #tpu.dot_dimension_numbers<[1], [0], [0], [1], [0, 0, 1, 1], [], []>} : vector<16x64xbf16>, vector<64x32xbf16>, vector<16x32xf32> -> vector<16x32xf32>
    %170 = vector.broadcast %6 : vector<1x32xf32> to vector<16x32xf32>
    %171 = arith.addf %169, %170 : vector<16x32xf32>
    %172 = arith.addf %95, %171 : vector<16x32xf32>
    %173 = vector.shape_cast %172 : vector<16x32xf32> to vector<2x8x32xf32>
    %c0_46 = arith.constant 0 : index
    %c0_47 = arith.constant 0 : index
    %c0_48 = arith.constant 0 : index
    %174 = vector.load %arg7[%c0_46, %c0_47, %c0_48] : memref<2x8x32xf32, #tpu.memory_space<vmem>>, vector<2x8x32xf32>
    tpu.vector_store %arg7[%c0_46, %c0_47, %c0_48], %173 {strides = array<i32>} : memref<2x8x32xf32, #tpu.memory_space<vmem>>, vector<2x8x32xf32>,
    return
  }
  func.func @transform_0(%arg0: i32) -> (i32, i32, i32) {
    %c0_i32 = arith.constant 0 : i32
    %c0_i32_0 = arith.constant 0 : i32
    %c0_i32_1 = arith.constant 0 : i32
    return %arg0, %c0_i32, %c0_i32_0 : i32, i32, i32
  }
  func.func @transform_1(%arg0: i32) -> (i32, i32) {
    %c0_i32 = arith.constant 0 : i32
    %c0_i32_0 = arith.constant 0 : i32
    %c0_i32_1 = arith.constant 0 : i32
    return %c0_i32, %c0_i32_0 : i32, i32
  }
  func.func @transform_2(%arg0: i32) -> (i32, i32) {
    %c0_i32 = arith.constant 0 : i32
    %c0_i32_0 = arith.constant 0 : i32
    %c0_i32_1 = arith.constant 0 : i32
    return %c0_i32, %c0_i32_0 : i32, i32
  }
  func.func @transform_3(%arg0: i32) -> (i32, i32) {
    %c0_i32 = arith.constant 0 : i32
    %c0_i32_0 = arith.constant 0 : i32
    %c0_i32_1 = arith.constant 0 : i32
    return %c0_i32, %c0_i32_0 : i32, i32
  }
  func.func @transform_4(%arg0: i32) -> (i32, i32) {
    %c0_i32 = arith.constant 0 : i32
    %c0_i32_0 = arith.constant 0 : i32
    %c0_i32_1 = arith.constant 0 : i32
    return %c0_i32, %c0_i32_0 : i32, i32
  }
  func.func @transform_5(%arg0: i32) -> (i32, i32) {
    %c0_i32 = arith.constant 0 : i32
    %c0_i32_0 = arith.constant 0 : i32
    %c0_i32_1 = arith.constant 0 : i32
    return %c0_i32, %c0_i32_0 : i32, i32
  }
  func.func @transform_6(%arg0: i32) -> (i32, i32, i32) {
    %c0_i32 = arith.constant 0 : i32
    %c0_i32_0 = arith.constant 0 : i32
    %c0_i32_1 = arith.constant 0 : i32
    return %arg0, %c0_i32, %c0_i32_0 : i32, i32, i32
  }
}

</mosaic_0001>

<bundles_post_ra>
// kernel: tpu_custom_call.1
= control target key start
LH: loop header
LB: loop body
LE: loop exit
PB: predicated region body
PF: predicated region fallthrough
CT: control target
= control target key end

     0   :  { %11 = vsyncpa [#allocation3], 0  ;;  %s2136_s0 = inlined_call_operand.vmem [shape: f32[2,8,32], index: 0, kind: input, shape index: {}]   ;;  %s2137_s1 = inlined_call_operand.vmem [shape: bf16[32,96], index: 1, kind: input, shape index: {}]   ;;  %s2138_s2 = inlined_call_operand.vmem [shape: bf16[32,32], index: 2, kind: input, shape index: {}]   ;;  %s2139_s3 = inlined_call_operand.hbm [shape: bf16[32,64], index: 3, kind: input, shape index: {}]   ;;  %s2140_s4 = inlined_call_operand.vmem [shape: bf16[64,32], index: 4, kind: input, shape index: {}]   ;;  %s2141_s5 = inlined_call_operand.vmem [shape: f32[8,128], index: 5, kind: input, shape index: {}]   ;;  %s2142_s6 = inlined_call_operand.hbm [shape: f32[2,8,32], index: 6, kind: output, shape index: {}]  }
   0x1   :  { %12 = vsyncpa [#allocation4], 0  ;;  %s1770_s21 = smov [#allocation2]   ;;  %s1722_s25 = scalar_lea.hbm %s2139_s3, 256 }
   0x2   :  { %s24_s22 = sshll.u32 %s1770_s21, 4  ;;  %p1723_p0 = scmp.ne.s32.totalorder %s2139_s3, %s1722_s25  ;;  %s25_s22 = int_to_ptr.vmem [resolvable:$true] %s24_s22 }
   0x3   :  { %p1726_p1 = scmp.lt.u32.totalorder %s1722_s25, %s2139_s3 }
   0x5   :  { %p1728_p2 = pnand %p1726_p1, %p1723_p0 }
   0x7   :  { %1731 = shalt.err (!%p1728_p2)
}
   0x8   :  { %s1732_s30 = scalar_lea.vmem %s25_s22, 256  ;;  %p1737_p4 = scmp.lt.s32.totalorder %s25_s22, %s25_s22 }
   0x9   :  { %p1733_p3 = scmp.ne.s32.totalorder %s25_s22, %s1732_s30  ;;  %p1738_p5 = scmp.lt.s32.totalorder %s1732_s30, %s1732_s30 }
   0xb   :  { %p1739_p6 = por %p1738_p5, %p1737_p4 }
   0xd   :  { %p1740_p7 = pnand %p1739_p6, %p1733_p3 }
   0xf   :  { %1743 = shalt.err (!%p1740_p7)
}
  0x10   :  { %s1771_s7 = smov 64   ;;  %s1772_s8 = smov 4  }
  0x11   :  { %30 = dma.hbm_to_vmem [thread:$0]  %s2139_s3, 256, %s25_s22, [#allocation3], %s1771_s7, %s1771_s7, %s1772_s8  }
  0x12   :  { %1766 = dma.done.wait [#allocation3], 256  }
  0x13   :  { %1767 = vsyncadd [#allocation3], 4294967040  ;;  %vm42_vm0 = vcmask 261120   ;;  %v1836_v0 = vld [vmem:[%s2136_s0] sm:$0xff]  ;;  %v1841_v1 = vld [vmem:[%s2136_s0 + $0x8] sm:$0xff]  ;;  %v1773_v15 = vmov 0.0   ;;  %v70_v21 = vlaneseq }
  0x14   :  { %v43_v2 = vsel %vm42_vm0, %v1836_v0, 0.0  ;;  %v46_v3 = vsel %vm42_vm0, %v1841_v1, 0.0  ;;  %v1668_v14 = vld [vmem:[%s2137_s1] sm:$0xff]   ;;  %1492 = vmatprep.subr.bf16.mxu0 %v1773_v15  ;;  %1500 = vmatprep.subr.bf16.mxu1 %v1773_v15  ;;  %v1669_v16 = vld [vmem:[%s2137_s1 + $0x8] sm:$0xff]   ;;  %vm1774_vm1 = vmmov 0   ;;  %s1776_s18 = smov 120  }
  0x15   :  { %44 = vadd.xlane.f32.xlu0 %v43_v2  ;;  %1493 = vmatpush3.bf16.msra.mxu0 %v1668_v14  ;;  %v1865_v24 = vshrl.u32 %v70_v21, 7  ;;  %v1871_v26 = vld [vmem:[%s2141_s5] sm:$0xff]  ;;  %s1775_s5 = smov 112   ;;  %s1777_s19 = smov 104   ;;  %vm178_vm2 = vcmask 64512   ;;  %vm669_vm3 = vcmask 1043456  }
  0x16   :  { %1496 = vmatprep.mubr.msk.bf16.mxu0 %vm1774_vm1, %v1773_v15  ;;  %1494 = vmatprep.subr.bf16.mxu0 %v1773_v15  ;;  %s1778_s20 = smov 96   ;;  %s1779_s21 = smov 8   ;;  %vm1075_vm4 = vcmask 130048   ;;  %vm1078_vm5 = vcmask 195584   ;;  %vm1348_vm6 = vcmask 523264  }
  0x17   :  { %1502 = vmatprep.mubr.msk.bf16.mxu1 %vm1774_vm1, %v1773_v15  ;;  %v72_v25 = vsub.s32 4, %v1865_v24  ;;  %v78_v30 = vsub.s32 5, %v1865_v24  ;;  %v89_v39 = vsub.s32 0, %v1865_v24  ;;  %s1780_s26 = smov 16   ;;  %s1781_s27 = smov 24  }
  0x19   :  { %47 = vadd.xlane.f32.xlu0 %v46_v3  ;;  %1495 = vmatpush3.bf16.msra.mxu0 %v1669_v16  ;;  %v73_v29 = vrot.slane %v1871_v26, %v72_v25  ;;  %v79_v34 = vrot.slane %v1871_v26, %v78_v30  ;;  %v90_v40 = vrot.slane %v1871_v26, %v89_v39 }
  0x1a   :  { %1506 = vmatprep.subr.bf16.mxu0 %v1773_v15 }
  0xa2   :  { %v45_v4 = vpop.xlane.xlu0 %44 }
  0xa3   :  { %v50_v5 = vmul.f32 0.03125, %v45_v4 }
  0xa5   :  { %v52_v6 = vsub.f32 %v1836_v0, %v50_v5 }
  0xa6   :  { %v48_v7 = vpop.xlane.xlu0 %47 }
  0xa7   :  { %v51_v8 = vmul.f32 0.03125, %v48_v7  ;;  %v54_v9 = vmul.f32 %v52_v6, %v52_v6 }
  0xa9   :  { %v53_v10 = vsub.f32 %v1841_v1, %v51_v8  ;;  %v56_v11 = vsel %vm42_vm0, %v54_v9, 0.0 }
  0xaa   :  { %57 = vadd.xlane.f32.xlu1 %v56_v11 }
  0xab   :  { %v55_v12 = vmul.f32 %v53_v10, %v53_v10 }
  0xad   :  { %v59_v13 = vsel %vm42_vm0, %v55_v12, 0.0 }
  0xae   :  { %60 = vadd.xlane.f32.xlu1 %v59_v13 }
 0x137   :  { %v58_v17 = vpop.xlane.xlu1 %57 }
 0x138   :  { %v62_v18 = vmul.f32 0.03125, %v58_v17 }
 0x13a   :  { %v64_v19 = vadd.f32 1e-05, %v62_v18 }
 0x13b   :  { %v61_v20 = vpop.xlane.xlu1 %60 }
 0x13c   :  { %1678 = vrsqrt.f32 %v64_v19  ;;  %v63_v22 = vmul.f32 0.03125, %v61_v20 }
 0x13e   :  { %v65_v23 = vadd.f32 1e-05, %v63_v22 }
 0x140   :  { %1680 = vrsqrt.f32 %v65_v23 }
 0x146   :  { %v1679_v27 = vpop.eup %1678 }
 0x147   :  { %v68_v28 = vmul.f32 %v1679_v27, %v52_v6 }
 0x149   :  { %v74_v33 = vmul.f32 %v73_v29, %v68_v28 }
 0x14a   :  { %v1681_v31 = vpop.eup %1680 }
 0x14b   :  { %v69_v32 = vmul.f32 %v1681_v31, %v53_v10  ;;  %v80_v36 = vadd.f32 %v79_v34, %v74_v33 }
 0x14d   :  { %v75_v35 = vmul.f32 %v73_v29, %v69_v32 }
 0x14f   :  { %v81_v37 = vadd.f32 %v79_v34, %v75_v35 }
 0x151   :  { %v82_v38 = vpack.c.bf16 %v81_v37, %v80_v36 }
 0x153   :  { %1497 = vmatmul.mubr.msk.bf16.vlgmr.msra.gmra.mrb[0].mxu0 %vm42_vm0, %v82_v38 }
 0x154   :  { %1508 = vmatprep.mubr.msk.bf16.mxu0 %vm1774_vm1, %v1773_v15 }
 0x226   :  { %v140_v41 = vpop.f32.mrb[0].mxu0 }
 0x227   :  { %v1498_v42 = vpop.f32.mrb[1].mxu0  ;;  %v141_v44 = vadd.f32 %v140_v41, %v90_v40 }
 0x228   :  { %v143_v43 = vpop.f32.mrb[2].mxu0 }
 0x229   :  { %v144_v45 = vadd.f32 %v143_v43, %v90_v40  ;;  %v1499_v46 = vpop.f32.mrb[3].mxu0  ;;  %v167_v49 = vpack.c.bf16 %v141_v44, %v141_v44 }
 0x22b   :  { %v1643_v47 = vpack.i.bf16 %v144_v45, %v141_v44  ;;  %v1881_v48 = vpack.c.bf16 %v144_v45, %v144_v45 }
 0x22d   :  { %1644 = vrot.lane.b32.xlu1 %v1643_v47, %s1775_s5  ;;  %1639 = vrot.lane.b32.xlu0 %v1643_v47, %s1776_s18 }
 0x231   :  { %1649 = vrot.lane.b32.xlu1 %v1643_v47, %s1777_s19  ;;  %226 = vrot.lane.b32.xlu0 %v1881_v48, %s1778_s20 }
 0x235   :  { %176 = vrot.lane.b32.xlu1 %v167_v49, %s1778_s20 }
 0x29f   :  { %v1645_v50 = vpop.permute.xlu1 %1644  ;;  %v1640_v51 = vpop.permute.xlu0 %1639 }
 0x2a0   :  { %v1642_v52 = vunpack.i.h.bf16 %v1640_v51  ;;  %v1641_v53 = vunpack.i.l.bf16 %v1640_v51  ;;  %v1647_v54 = vunpack.i.h.bf16 %v1645_v50  ;;  %v1646_v55 = vunpack.i.l.bf16 %v1645_v50 }
 0x2a2   :  { %v1886_v56 = vpack.c.bf16 %v1642_v52, %v1642_v52  ;;  %v1888_v57 = vpack.c.bf16 %v1641_v53, %v1641_v53  ;;  %v1895_v61 = vpack.c.bf16 %v1647_v54, %v1647_v54  ;;  %v1897_v62 = vpack.c.bf16 %v1646_v55, %v1646_v55 }
 0x2a3   :  { %v1650_v58 = vpop.permute.xlu1 %1649  ;;  %v227_v59 = vpop.permute.xlu0 %226 }
 0x2a4   :  { %v232_v60 = vsel %vm178_vm2, %v227_v59, 0  ;;  %275 = vrot.lane.b32.xlu1 %v1888_v57, %s1778_s20  ;;  %324 = vrot.lane.b32.xlu0 %v1886_v56, %s1778_s20  ;;  %v1652_v63 = vunpack.i.h.bf16 %v1650_v58  ;;  %v1651_v2 = vunpack.i.l.bf16 %v1650_v58 }
 0x2a5   :  { %1507 = vmatpush3.bf16.xpose.msra.mxu0 %v232_v60 }
 0x2a6   :  { %1518 = vmatprep.subr.bf16.mxu0 %v1773_v15  ;;  %v1905_v5 = vpack.c.bf16 %v1652_v63, %v1652_v63  ;;  %v1907_v6 = vpack.c.bf16 %v1651_v2, %v1651_v2 }
 0x2a7   :  { %v177_v3 = vpop.permute.xlu1 %176 }
 0x2a8   :  { %373 = vrot.lane.b32.xlu1 %v1897_v62, %s1778_s20  ;;  %422 = vrot.lane.b32.xlu0 %v1895_v61, %s1778_s20  ;;  %v183_v4 = vsel %vm178_vm2, %v177_v3, 0 }
 0x2a9   :  { %1501 = vmatpush3.bf16.xpose.msra.mxu1 %v183_v4 }
 0x2aa   :  { %1512 = vmatprep.subr.bf16.mxu1 %v1773_v15 }
 0x2ac   :  { %471 = vrot.lane.b32.xlu1 %v1907_v6, %s1778_s20  ;;  %520 = vrot.lane.b32.xlu0 %v1905_v5, %s1778_s20 }
 0x2ad   :  { %1509 = vmatmul.mubr.msk.bf16.vlgmr.msra.gmra.mrb[4].mxu0 %vm178_vm2, %v1881_v48 }
 0x2ae   :  { %1520 = vmatprep.mubr.msk.bf16.mxu0 %vm1774_vm1, %v1773_v15 }
 0x2b0   :  { %1503 = vmatmul.mubr.msk.bf16.vlgmr.msra.gmra.mrb[0].mxu1 %vm178_vm2, %v167_v49  ;;  %664 = vrot.lane.b32.xlu1 %v167_v49, %s1771_s7 }
 0x2b1   :  { %1514 = vmatprep.mubr.msk.bf16.mxu1 %vm1774_vm1, %v1773_v15 }
 0x316   :  { %v276_v7 = vpop.permute.xlu1 %275  ;;  %v325_v8 = vpop.permute.xlu0 %324 }
 0x317   :  { %v281_v9 = vsel %vm178_vm2, %v276_v7, 0  ;;  %v330_v10 = vsel %vm178_vm2, %v325_v8, 0 }
 0x318   :  { %1513 = vmatpush3.bf16.xpose.msra.mxu1 %v281_v9  ;;  %1519 = vmatpush3.bf16.xpose.msra.mxu0 %v330_v10 }
 0x319   :  { %1524 = vmatprep.subr.bf16.mxu1 %v1773_v15  ;;  %1530 = vmatprep.subr.bf16.mxu0 %v1773_v15 }
 0x31a   :  { %v374_v11 = vpop.permute.xlu1 %373  ;;  %v423_v12 = vpop.permute.xlu0 %422 }
 0x31b   :  { %v379_v13 = vsel %vm178_vm2, %v374_v11, 0  ;;  %v428_v14 = vsel %vm178_vm2, %v423_v12, 0 }
 0x31e   :  { %v472_v16 = vpop.permute.xlu1 %471  ;;  %v521_v17 = vpop.permute.xlu0 %520 }
 0x31f   :  { %1515 = vmatmul.mubr.msk.bf16.vlgmr.msra.gmra.mrb[4].mxu1 %vm178_vm2, %v1888_v57  ;;  %1521 = vmatmul.mubr.msk.bf16.vlgmr.msra.gmra.mrb[8].mxu0 %vm178_vm2, %v1886_v56  ;;  %v477_v18 = vsel %vm178_vm2, %v472_v16, 0  ;;  %v526_v19 = vsel %vm178_vm2, %v521_v17, 0 }
 0x320   :  { %1525 = vmatpush3.bf16.xpose.msra.mxu1 %v379_v13  ;;  %1531 = vmatpush3.bf16.xpose.msra.mxu0 %v428_v14 }
 0x321   :  { %1526 = vmatprep.mubr.msk.bf16.mxu1 %vm1774_vm1, %v1773_v15  ;;  %1532 = vmatprep.mubr.msk.bf16.mxu0 %vm1774_vm1, %v1773_v15 }
 0x322   :  { %1536 = vmatprep.subr.bf16.mxu1 %v1773_v15  ;;  %1542 = vmatprep.subr.bf16.mxu0 %v1773_v15  ;;  %v665_v20 = vpop.permute.xlu1 %664 }
 0x323   :  { %v671_v21 = vsel %vm669_vm3, %v665_v20, 0 }
 0x327   :  { %1527 = vmatmul.mubr.msk.bf16.vlgmr.msra.gmra.mrb[8].mxu1 %vm178_vm2, %v1897_v62  ;;  %1533 = vmatmul.mubr.msk.bf16.vlgmr.msra.gmra.mrb[12].mxu0 %vm178_vm2, %v1895_v61 }
 0x328   :  { %1537 = vmatpush3.bf16.xpose.msra.mxu1 %v477_v18  ;;  %1543 = vmatpush3.bf16.xpose.msra.mxu0 %v526_v19 }
 0x329   :  { %1538 = vmatprep.mubr.msk.bf16.mxu1 %vm1774_vm1, %v1773_v15  ;;  %1544 = vmatprep.mubr.msk.bf16.mxu0 %vm1774_vm1, %v1773_v15 }
 0x32a   :  { %1548 = vmatprep.subr.bf16.mxu1 %v1773_v15  ;;  %1554 = vmatprep.subr.bf16.mxu0 %v1773_v15 }
 0x32f   :  { %1539 = vmatmul.mubr.msk.bf16.vlgmr.msra.gmra.mrb[12].mxu1 %vm178_vm2, %v1907_v6  ;;  %1545 = vmatmul.mubr.msk.bf16.vlgmr.msra.gmra.mrb[16].mxu0 %vm178_vm2, %v1905_v5 }
 0x330   :  { %1549 = vmatpush3.bf16.msra.mxu1 %v671_v21  ;;  %1556 = vmatprep.mubr.msk.bf16.mxu0 %vm1774_vm1, %v1773_v15 }
 0x331   :  { %1550 = vmatprep.mubr.msk.bf16.mxu1 %vm1774_vm1, %v1773_v15  ;;  %1560 = vmatprep.subr.bf16.mxu1 %v1773_v15 }
 0x380   :  { %v268_v22 = vpop.f32.mrb[4].mxu0 }
 0x381   :  { %v1510_v23 = vpop.f32.mrb[5].mxu0  ;;  %v571_v25 = vsel %vm178_vm2, %v268_v22, -inf }
 0x382   :  { %572 = vmax.xlane.f32.xlu0 %v571_v25  ;;  %v271_v27 = vpop.f32.mrb[6].mxu0 }
 0x383   :  { %v1511_v28 = vpop.f32.mrb[7].mxu0  ;;  %v219_v29 = vpop.f32.mrb[0].mxu1 }
 0x384   :  { %v1504_v30 = vpop.f32.mrb[1].mxu1  ;;  %v568_v31 = vsel %vm178_vm2, %v219_v29, -inf }
 0x385   :  { %v222_v32 = vpop.f32.mrb[2].mxu1  ;;  %569 = vmax.xlane.f32.xlu1 %v568_v31 }
 0x386   :  { %v1505_v33 = vpop.f32.mrb[3].mxu1 }
 0x3f2   :  { %v317_v34 = vpop.f32.mrb[4].mxu1  ;;  %v366_v35 = vpop.f32.mrb[8].mxu0 }
 0x3f3   :  { %v1516_v36 = vpop.f32.mrb[5].mxu1  ;;  %v1522_v37 = vpop.f32.mrb[9].mxu0  ;;  %v574_v38 = vsel %vm178_vm2, %v317_v34, -inf  ;;  %v577_v43 = vsel %vm178_vm2, %v366_v35, -inf }
 0x3f4   :  { %v320_v39 = vpop.f32.mrb[6].mxu1  ;;  %575 = vmax.xlane.f32.xlu0 %v574_v38  ;;  %v369_v40 = vpop.f32.mrb[10].mxu0 }
 0x3f5   :  { %v1517_v41 = vpop.f32.mrb[7].mxu1  ;;  %v1523_v42 = vpop.f32.mrb[11].mxu0 }
 0x3f8   :  { %578 = vmax.xlane.f32.xlu0 %v577_v43 }
 0x3fa   :  { %v415_v44 = vpop.f32.mrb[8].mxu1  ;;  %v1964_v45 = vpop.f32.mrb[12].mxu0 }
 0x3fb   :  { %v1528_v46 = vpop.f32.mrb[9].mxu1  ;;  %v1534_v47 = vpop.f32.mrb[13].mxu0  ;;  %v580_v49 = vsel %vm178_vm2, %v415_v44, -inf  ;;  %v583_v50 = vsel %vm178_vm2, %v1964_v45, -inf }
 0x3fc   :  { %581 = vmax.xlane.f32.xlu1 %v580_v49  ;;  %v418_v51 = vpop.f32.mrb[10].mxu1  ;;  %584 = vmax.xlane.f32.xlu0 %v583_v50  ;;  %v467_v52 = vpop.f32.mrb[14].mxu0 }
 0x3fd   :  { %v1529_v53 = vpop.f32.mrb[11].mxu1  ;;  %v1535_v54 = vpop.f32.mrb[15].mxu0 }
 0x402   :  { %v513_v55 = vpop.f32.mrb[12].mxu1  ;;  %v1969_v58 = vpop.f32.mrb[16].mxu0 }
 0x403   :  { %v1540_v59 = vpop.f32.mrb[13].mxu1  ;;  %v1546_v60 = vpop.f32.mrb[17].mxu0  ;;  %v586_v63 = vsel %vm178_vm2, %v513_v55, -inf  ;;  %v589_v2 = vsel %vm178_vm2, %v1969_v58, -inf }
 0x404   :  { %587 = vmax.xlane.f32.xlu1 %v586_v63  ;;  %v516_v3 = vpop.f32.mrb[14].mxu1  ;;  %590 = vmax.xlane.f32.xlu0 %v589_v2  ;;  %v565_v4 = vpop.f32.mrb[18].mxu0 }
 0x405   :  { %v1541_v7 = vpop.f32.mrb[15].mxu1  ;;  %v1547_v8 = vpop.f32.mrb[19].mxu0 }
 0x40f   :  { %v573_v9 = vpop.xlane.xlu0 %572 }
 0x410   :  { %v593_v10 = vsub.f32 %v268_v22, %v573_v9 }
 0x412   :  { %v570_v11 = vpop.xlane.xlu1 %569  ;;  %v602_v12 = vmul.f32 1.442695, %v593_v10 }
 0x413   :  { %v592_v13 = vsub.f32 %v219_v29, %v570_v11 }
 0x414   :  { %1682 = vpow2.f32 %v602_v12 }
 0x415   :  { %761 = vrot.lane.b32.xlu1 %v1888_v57, %s1771_s7  ;;  %v600_v14 = vmul.f32 1.442695, %v592_v13 }
 0x417   :  { %1684 = vpow2.f32 %v600_v14 }
 0x419   :  { %809 = vrot.lane.b32.xlu1 %v1886_v56, %s1771_s7 }
 0x41a   :  { %713 = vrot.lane.b32.xlu0 %v1881_v48, %s1771_s7 }
 0x41e   :  { %v1683_v16 = vpop.eup %1682 }
 0x41f   :  { %v619_v17 = vsel %vm178_vm2, %v1683_v16, 0.0 }
 0x421   :  { %v1981_v18 = vpop.eup %1684 }
 0x422   :  { %v616_v56 = vsel %vm178_vm2, %v1981_v18, 0.0 }
 0x439   :  { %620 = vadd.xlane.f32.xlu0 %v619_v17 }
 0x43d   :  { %617 = vadd.xlane.f32.xlu1 %v616_v56 }
 0x44e   :  { %857 = vrot.lane.b32.xlu1 %v1897_v62, %s1771_s7 }
 0x481   :  { %v576_v48 = vpop.xlane.xlu0 %575 }
 0x482   :  { %v594_v57 = vsub.f32 %v317_v34, %v576_v48 }
 0x484   :  { %v604_v19 = vmul.f32 1.442695, %v594_v57 }
 0x485   :  { %v579_v20 = vpop.xlane.xlu0 %578 }
 0x486   :  { %1686 = vpow2.f32 %v604_v19  ;;  %v595_v21 = vsub.f32 %v366_v35, %v579_v20 }
 0x488   :  { %v606_v22 = vmul.f32 1.442695, %v595_v21 }
 0x489   :  { %v582_v23 = vpop.xlane.xlu1 %581  ;;  %v585_v28 = vpop.xlane.xlu0 %584 }
 0x48a   :  { %1688 = vpow2.f32 %v606_v22  ;;  %v596_v25 = vsub.f32 %v415_v44, %v582_v23  ;;  %v597_v42 = vsub.f32 %v1964_v45, %v585_v28 }
 0x48c   :  { %v608_v27 = vmul.f32 1.442695, %v596_v25  ;;  %v610_v43 = vmul.f32 1.442695, %v597_v42 }
 0x48e   :  { %1690 = vpow2.f32 %v608_v27 }
 0x490   :  { %v1987_v29 = vpop.eup %1686 }
 0x491   :  { %v588_v30 = vpop.xlane.xlu1 %587  ;;  %v591_v31 = vpop.xlane.xlu0 %590  ;;  %v622_v62 = vsel %vm178_vm2, %v1987_v29, 0.0 }
 0x492   :  { %v598_v32 = vsub.f32 %v513_v55, %v588_v30  ;;  %623 = vadd.xlane.f32.xlu1 %v622_v62  ;;  %v599_v44 = vsub.f32 %v1969_v58, %v591_v31 }
 0x494   :  { %v1991_v33 = vpop.eup %1688  ;;  %v612_v34 = vmul.f32 1.442695, %v598_v32  ;;  %v614_v46 = vmul.f32 1.442695, %v599_v44 }
 0x495   :  { %v714_v35 = vpop.permute.xlu0 %713  ;;  %v625_v36 = vsel %vm178_vm2, %v1991_v33, 0.0  ;;  %v762_v47 = vpop.permute.xlu1 %761 }
 0x496   :  { %1692 = vpow2.f32 %v612_v34  ;;  %v719_v37 = vsel %vm669_vm3, %v714_v35, 0  ;;  %626 = vadd.xlane.f32.xlu0 %v625_v36  ;;  %v767_v2 = vsel %vm669_vm3, %v762_v47, 0 }
 0x497   :  { %1555 = vmatpush3.bf16.msra.mxu0 %v719_v37  ;;  %1694 = vpow2.f32 %v610_v43 }
 0x498   :  { %v1996_v38 = vpop.eup %1690  ;;  %1566 = vmatprep.subr.bf16.mxu0 %v1773_v15  ;;  %1696 = vpow2.f32 %v614_v46 }
 0x499   :  { %v628_v39 = vsel %vm178_vm2, %v1996_v38, 0.0  ;;  %v810_v49 = vpop.permute.xlu1 %809 }
 0x49a   :  { %629 = vadd.xlane.f32.xlu1 %v628_v39  ;;  %v815_v59 = vsel %vm669_vm3, %v810_v49, 0 }
 0x4a0   :  { %v2001_v40 = vpop.eup %1692 }
 0x4a1   :  { %v634_v41 = vsel %vm178_vm2, %v2001_v40, 0.0  ;;  %v2011_v51 = vpop.eup %1694 }
 0x4a2   :  { %635 = vadd.xlane.f32.xlu1 %v634_v41  ;;  %v2015_v53 = vpop.eup %1696 }
 0x4ac   :  { %905 = vrot.lane.b32.xlu0 %v1895_v61, %s1771_s7  ;;  %v631_v61 = vsel %vm178_vm2, %v2011_v51, 0.0 }
 0x4b3   :  { %953 = vrot.lane.b32.xlu1 %v1907_v6, %s1771_s7  ;;  %v637_v6 = vsel %vm178_vm2, %v2015_v53, 0.0 }
 0x4c6   :  { %v621_v50 = vpop.xlane.xlu0 %620 }
 0x4c7   :  { %1698 = vrcp.f32 %v621_v50 }
 0x4ca   :  { %v618_v52 = vpop.xlane.xlu1 %617 }
 0x4cb   :  { %1700 = vrcp.f32 %v618_v52  ;;  %632 = vadd.xlane.f32.xlu0 %v631_v61 }
 0x4ce   :  { %v858_v3 = vpop.permute.xlu1 %857 }
 0x4cf   :  { %638 = vadd.xlane.f32.xlu0 %v637_v6  ;;  %v863_v13 = vsel %vm669_vm3, %v858_v3, 0 }
 0x4d1   :  { %v1699_v45 = vpop.eup %1698 }
 0x4d2   :  { %v649_v54 = vmul.f32 %v1699_v45, %v1683_v16 }
 0x4d4   :  { %v657_v55 = vpack.c.bf16 %v649_v54, %v649_v54 }
 0x4d5   :  { %v1701_v58 = vpop.eup %1700 }
 0x4d6   :  { %v648_v60 = vmul.f32 %v1701_v58, %v1981_v18  ;;  %1557 = vmatmul.mubr.msk.bf16.vlgmr.msra.gmra.mrb[20].mxu0 %vm178_vm2, %v657_v55 }
 0x4d7   :  { %1567 = vmatpush3.bf16.msra.mxu0 %v815_v59  ;;  %1568 = vmatprep.mubr.msk.bf16.mxu0 %vm1774_vm1, %v1773_v15 }
 0x4d8   :  { %v656_v63 = vpack.c.bf16 %v648_v60, %v648_v60  ;;  %1578 = vmatprep.subr.bf16.mxu0 %v1773_v15 }
 0x4da   :  { %1551 = vmatmul.mubr.msk.bf16.vlgmr.msra.gmra.mrb[16].mxu1 %vm178_vm2, %v656_v63  ;;  %v1670_v63 = vld [vmem:[%s2138_s2] sm:$0xff]  }
 0x4db   :  { %1561 = vmatpush3.bf16.msra.mxu1 %v767_v2  ;;  %1562 = vmatprep.mubr.msk.bf16.mxu1 %vm1774_vm1, %v1773_v15  ;;  %v1671_v2 = vld [vmem:[%s2138_s2 + $0x8] sm:$0xff]  }
 0x4dc   :  { %1572 = vmatprep.subr.bf16.mxu1 %v1773_v15 }
 0x4e5   :  { %1001 = vrot.lane.b32.xlu0 %v1905_v5, %s1771_s7 }
 0x51f   :  { %v624_v4 = vpop.xlane.xlu1 %623 }
 0x520   :  { %1702 = vrcp.f32 %v624_v4 }
 0x523   :  { %v627_v7 = vpop.xlane.xlu0 %626 }
 0x524   :  { %1704 = vrcp.f32 %v627_v7 }
 0x527   :  { %v630_v8 = vpop.xlane.xlu1 %629  ;;  %v906_v5 = vpop.permute.xlu0 %905 }
 0x528   :  { %1706 = vrcp.f32 %v630_v8  ;;  %v911_v48 = vsel %vm669_vm3, %v906_v5, 0 }
 0x52a   :  { %v1703_v9 = vpop.eup %1702 }
 0x52b   :  { %v650_v10 = vmul.f32 %v1703_v9, %v1987_v29 }
 0x52d   :  { %v658_v11 = vpack.c.bf16 %v650_v10, %v650_v10 }
 0x52e   :  { %v1705_v12 = vpop.eup %1704 }
 0x52f   :  { %v651_v14 = vmul.f32 %v1705_v12, %v1991_v33  ;;  %1563 = vmatmul.mubr.msk.bf16.vlgmr.msra.gmra.mrb[20].mxu1 %vm178_vm2, %v658_v11  ;;  %v636_v16 = vpop.xlane.xlu1 %635 }
 0x530   :  { %1573 = vmatpush3.bf16.msra.mxu1 %v863_v13  ;;  %1708 = vrcp.f32 %v636_v16  ;;  %1574 = vmatprep.mubr.msk.bf16.mxu1 %vm1774_vm1, %v1773_v15 }
 0x531   :  { %v659_v17 = vpack.c.bf16 %v651_v14, %v651_v14  ;;  %1584 = vmatprep.subr.bf16.mxu1 %v1773_v15 }
 0x532   :  { %v1707_v18 = vpop.eup %1706 }
 0x533   :  { %v652_v56 = vmul.f32 %v1707_v18, %v1996_v38  ;;  %1569 = vmatmul.mubr.msk.bf16.vlgmr.msra.gmra.mrb[24].mxu0 %vm178_vm2, %v659_v17  ;;  %v954_v57 = vpop.permute.xlu1 %953 }
 0x534   :  { %1579 = vmatpush3.bf16.msra.mxu0 %v911_v48  ;;  %1580 = vmatprep.mubr.msk.bf16.mxu0 %vm1774_vm1, %v1773_v15  ;;  %v959_v20 = vsel %vm669_vm3, %v954_v57, 0 }
 0x535   :  { %v660_v19 = vpack.c.bf16 %v652_v56, %v652_v56  ;;  %1590 = vmatprep.subr.bf16.mxu0 %v1773_v15 }
 0x537   :  { %1575 = vmatmul.mubr.msk.bf16.vlgmr.msra.gmra.mrb[24].mxu1 %vm178_vm2, %v660_v19 }
 0x538   :  { %1585 = vmatpush3.bf16.msra.mxu1 %v959_v20  ;;  %1586 = vmatprep.mubr.msk.bf16.mxu1 %vm1774_vm1, %v1773_v15 }
 0x539   :  { %1596 = vmatprep.subr.bf16.mxu1 %v1773_v15 }
 0x53a   :  { %v1709_v21 = vpop.eup %1708 }
 0x53b   :  { %v654_v22 = vmul.f32 %v1709_v21, %v2001_v40 }
 0x53d   :  { %v662_v23 = vpack.c.bf16 %v654_v22, %v654_v22 }
 0x53f   :  { %1587 = vmatmul.mubr.msk.bf16.vlgmr.msra.gmra.mrb[28].mxu1 %vm178_vm2, %v662_v23 }
 0x540   :  { %1600 = vmatprep.mubr.msk.bf16.mxu1 %vm1774_vm1, %v1773_v15  ;;  %1597 = vmatpush3.bf16.msra.mxu1 %v1670_v63 }
 0x541   :  { %1598 = vmatprep.subr.bf16.mxu1 %v1773_v15 }
 0x544   :  { %1599 = vmatpush3.bf16.msra.mxu1 %v1671_v2  ;;  %v1182_v2 = vsub.s32 7, %v1865_v24 }
 0x545   :  { %1612 = vmatprep.subr.bf16.mxu1 %v1773_v15 }
 0x558   :  { %v633_v25 = vpop.xlane.xlu0 %632 }
 0x559   :  { %1710 = vrcp.f32 %v633_v25 }
 0x55c   :  { %v639_v27 = vpop.xlane.xlu0 %638 }
 0x55d   :  { %1712 = vrcp.f32 %v639_v27 }
 0x560   :  { %v1002_v30 = vpop.permute.xlu0 %1001 }
 0x561   :  { %v1007_v32 = vsel %vm669_vm3, %v1002_v30, 0  ;;  %v1088_v30 = vsub.s32 1, %v1865_v24 }
 0x563   :  { %v1711_v28 = vpop.eup %1710 }
 0x564   :  { %v653_v29 = vmul.f32 %v1711_v28, %v2011_v51 }
 0x566   :  { %v661_v31 = vpack.c.bf16 %v653_v29, %v653_v29 }
 0x567   :  { %v1713_v62 = vpop.eup %1712 }
 0x568   :  { %1581 = vmatmul.mubr.msk.bf16.vlgmr.msra.gmra.mrb[28].mxu0 %vm178_vm2, %v661_v31  ;;  %v655_v33 = vmul.f32 %v1713_v62, %v2015_v53  ;;  %v1089_v31 = vrot.slane %v1871_v26, %v1088_v30 }
 0x569   :  { %1591 = vmatpush3.bf16.msra.mxu0 %v1007_v32  ;;  %1592 = vmatprep.mubr.msk.bf16.mxu0 %vm1774_vm1, %v1773_v15 }
 0x56a   :  { %1604 = vmatprep.subr.bf16.mxu0 %v1773_v15  ;;  %v663_v34 = vpack.c.bf16 %v655_v33, %v655_v33 }
 0x570   :  { %1593 = vmatmul.mubr.msk.bf16.vlgmr.msra.gmra.mrb[32].mxu0 %vm178_vm2, %v663_v34 }
 0x571   :  { %1608 = vmatprep.mubr.msk.bf16.mxu0 %vm1774_vm1, %v1773_v15 }
 0x5a9   :  { %v755_v35 = vpop.f32.mrb[20].mxu0 }
 0x5aa   :  { %v1558_v36 = vpop.f32.mrb[21].mxu0 }
 0x5ab   :  { %v758_v37 = vpop.f32.mrb[22].mxu0 }
 0x5ac   :  { %v1559_v38 = vpop.f32.mrb[23].mxu0 }
 0x5ad   :  { %v707_v39 = vpop.f32.mrb[16].mxu1 }
 0x5ae   :  { %v1552_v40 = vpop.f32.mrb[17].mxu1 }
 0x5af   :  { %v710_v41 = vpop.f32.mrb[18].mxu1 }
 0x5b0   :  { %v1553_v42 = vpop.f32.mrb[19].mxu1 }
 0x602   :  { %v803_v43 = vpop.f32.mrb[20].mxu1 }
 0x603   :  { %v1564_v44 = vpop.f32.mrb[21].mxu1 }
 0x604   :  { %v806_v46 = vpop.f32.mrb[22].mxu1 }
 0x605   :  { %v1565_v47 = vpop.f32.mrb[23].mxu1 }
 0x606   :  { %v851_v49 = vpop.f32.mrb[24].mxu0 }
 0x607   :  { %v1653_v50 = vpack.i.bf16 %v851_v49, %v803_v43  ;;  %v1570_v51 = vpop.f32.mrb[25].mxu0 }
 0x608   :  { %v854_v52 = vpop.f32.mrb[26].mxu0  ;;  %v1672_v51 = vld [vmem:[#allocation2] sm:$0xff]  }
 0x609   :  { %1654 = vrot.lane.b32.xlu1 %v1653_v50, %s1779_s21  ;;  %v1571_v61 = vpop.f32.mrb[27].mxu0  ;;  %1605 = vmatpush3.bf16.msra.mxu0 %v1672_v51  ;;  %v1673_v52 = vld [vmem:[#allocation2 + $0x8] sm:$0xff]  }
 0x60a   :  { %v899_v53 = vpop.f32.mrb[24].mxu1  ;;  %1606 = vmatprep.subr.bf16.mxu0 %v1773_v15 }
 0x60b   :  { %v1576_v6 = vpop.f32.mrb[25].mxu1 }
 0x60c   :  { %v902_v45 = vpop.f32.mrb[26].mxu1 }
 0x60d   :  { %v1577_v54 = vpop.f32.mrb[27].mxu1  ;;  %1607 = vmatpush3.bf16.msra.mxu0 %v1673_v52 }
 0x612   :  { %v995_v55 = vpop.f32.mrb[28].mxu1 }
 0x613   :  { %v1588_v58 = vpop.f32.mrb[29].mxu1 }
 0x614   :  { %v998_v59 = vpop.f32.mrb[30].mxu1  ;;  %v1176_v58 = vsub.s32 6, %v1865_v24 }
 0x615   :  { %v1589_v60 = vpop.f32.mrb[31].mxu1 }
 0x616   :  { %v1177_v60 = vrot.slane %v1871_v26, %v1176_v58 }
 0x63b   :  { %v947_v3 = vpop.f32.mrb[28].mxu0 }
 0x63c   :  { %v1658_v4 = vpack.i.bf16 %v947_v3, %v899_v53  ;;  %v1582_v7 = vpop.f32.mrb[29].mxu0 }
 0x63d   :  { %v950_v8 = vpop.f32.mrb[30].mxu0 }
 0x63e   :  { %1659 = vrot.lane.b32.xlu0 %v1658_v4, %s1780_s26  ;;  %v1583_v9 = vpop.f32.mrb[31].mxu0  ;;  %v1183_v8 = vrot.slane %v1871_v26, %v1182_v2 }
 0x643   :  { %v1043_v10 = vpop.f32.mrb[32].mxu0 }
 0x644   :  { %v1663_v11 = vpack.i.bf16 %v1043_v10, %v995_v55  ;;  %v1594_v12 = vpop.f32.mrb[33].mxu0 }
 0x645   :  { %v1046_v13 = vpop.f32.mrb[34].mxu0 }
 0x646   :  { %1664 = vrot.lane.b32.xlu1 %v1663_v11, %s1781_s27  ;;  %v1595_v14 = vpop.f32.mrb[35].mxu0  ;;  %v1674_v13 = vld [vmem:[%s2140_s4] sm:$0xff]  }
 0x647   :  { %v1675_v14 = vld [vmem:[%s2140_s4 + $0x8] sm:$0xff]  }
 0x67b   :  { %v1655_v16 = vpop.permute.xlu1 %1654 }
 0x67c   :  { %v1657_v17 = vunpack.i.h.bf16 %v1655_v16  ;;  %v1656_v18 = vunpack.i.l.bf16 %v1655_v16  ;;  %v1676_v16 = vld [vmem:[%s2140_s4 + $0x10] sm:$0xff]  }
 0x67e   :  { %v1074_v19 = vsel %vm178_vm2, %v755_v35, %v1657_v17  ;;  %v1073_v20 = vsel %vm178_vm2, %v707_v39, %v1656_v18  ;;  %v1193_v17 = vsub.s32 2, %v1865_v24 }
 0x680   :  { %v1194_v18 = vrot.slane %v1871_v26, %v1193_v17 }
 0x6b0   :  { %v1660_v5 = vpop.permute.xlu0 %1659 }
 0x6b1   :  { %v1662_v56 = vunpack.i.h.bf16 %v1660_v5  ;;  %v1661_v48 = vunpack.i.l.bf16 %v1660_v5  ;;  %v1677_v5 = vld [vmem:[%s2140_s4 + $0x18] sm:$0xff]   ;;  %s1782_s4 = smov [#allocation5]  }
 0x6b2   :  { %s1402_s11 = sshll.u32 %s1782_s4, 4  ;;  %s1403_s11 = int_to_ptr.vmem [resolvable:$true] %s1402_s11 }
 0x6b3   :  { %v1077_v23 = vsel %vm1075_vm4, %v1074_v19, %v1662_v56  ;;  %v1076_v25 = vsel %vm1075_vm4, %v1073_v20, %v1661_v48  ;;  %s1744_s12 = scalar_lea.vmem %s1403_s11, 256  ;;  %p1749_p9 = scmp.lt.s32.totalorder %s1403_s11, %s1403_s11 }
 0x6b4   :  { %p1745_p8 = scmp.ne.s32.totalorder %s1403_s11, %s1744_s12  ;;  %p1750_p10 = scmp.lt.s32.totalorder %s1744_s12, %s1744_s12 }
 0x6b6   :  { %p1751_p11 = por %p1750_p10, %p1749_p9 }
 0x6b8   :  { %v1665_v57 = vpop.permute.xlu1 %1664  ;;  %p1752_p12 = pnand %p1751_p11, %p1745_p8 }
 0x6b9   :  { %v1667_v21 = vunpack.i.h.bf16 %v1665_v57  ;;  %v1666_v22 = vunpack.i.l.bf16 %v1665_v57 }
 0x6bb   :  { %v1080_v27 = vsel %vm1078_vm5, %v1077_v23, %v1667_v21  ;;  %v1079_v28 = vsel %vm1078_vm5, %v1076_v25, %v1666_v22 }
 0x6bc   :  { %v1081_v29 = vpack.c.bf16 %v1080_v27, %v1079_v28 }
 0x6be   :  { %1601 = vmatmul.mubr.msk.bf16.vlgmr.msra.gmra.mrb[32].mxu1 %vm42_vm0, %v1081_v29 }
 0x6bf   :  { %1620 = vmatprep.mubr.msk.bf16.mxu1 %vm1774_vm1, %v1773_v15  ;;  %1613 = vmatpush3.bf16.msra.mxu1 %v1674_v13 }
 0x6c0   :  { %1614 = vmatprep.subr.bf16.mxu1 %v1773_v15 }
 0x6c3   :  { %1615 = vmatpush3.bf16.msra.mxu1 %v1675_v14 }
 0x6c4   :  { %1616 = vmatprep.subr.bf16.mxu1 %v1773_v15 }
 0x6c7   :  { %1617 = vmatpush3.bf16.msra.mxu1 %v1676_v16 }
 0x6c8   :  { %1618 = vmatprep.subr.bf16.mxu1 %v1773_v15 }
 0x6cb   :  { %1619 = vmatpush3.bf16.msra.mxu1 %v1677_v5 }
 0x791   :  { %v1139_v62 = vpop.f32.mrb[32].mxu1 }
 0x792   :  { %v1140_v32 = vadd.f32 %v1139_v62, %v1089_v31  ;;  %v1602_v33 = vpop.f32.mrb[33].mxu1 }
 0x793   :  { %v1142_v34 = vpop.f32.mrb[34].mxu1 }
 0x794   :  { %v2081_v35 = vadd.f32 %v1140_v32, %v1836_v0  ;;  %v1143_v36 = vadd.f32 %v1142_v34, %v1089_v31  ;;  %v1603_v37 = vpop.f32.mrb[35].mxu1 }
 0x796   :  { %v2084_v38 = vadd.f32 %v1143_v36, %v1841_v1  ;;  %v1148_v39 = vsel %vm42_vm0, %v2081_v35, 0.0 }
 0x797   :  { %1149 = vadd.xlane.f32.xlu0 %v1148_v39 }
 0x798   :  { %v1151_v40 = vsel %vm42_vm0, %v2084_v38, 0.0 }
 0x799   :  { %1152 = vadd.xlane.f32.xlu1 %v1151_v40 }
 0x824   :  { %v1150_v41 = vpop.xlane.xlu0 %1149 }
 0x825   :  { %v1154_v42 = vmul.f32 0.03125, %v1150_v41 }
 0x826   :  { %v1153_v43 = vpop.xlane.xlu1 %1152 }
 0x827   :  { %v1156_v44 = vsub.f32 %v2081_v35, %v1154_v42  ;;  %v1155_v0 = vmul.f32 0.03125, %v1153_v43 }
 0x829   :  { %v1157_v46 = vsub.f32 %v2084_v38, %v1155_v0  ;;  %v1158_v47 = vmul.f32 %v1156_v44, %v1156_v44 }
 0x82b   :  { %v1160_v1 = vsel %vm42_vm0, %v1158_v47, 0.0  ;;  %v1159_v49 = vmul.f32 %v1157_v46, %v1157_v46 }
 0x82c   :  { %1161 = vadd.xlane.f32.xlu0 %v1160_v1 }
 0x82d   :  { %v1163_v50 = vsel %vm42_vm0, %v1159_v49, 0.0 }
 0x830   :  { %1164 = vadd.xlane.f32.xlu0 %v1163_v50 }
 0x8b9   :  { %v1162_v61 = vpop.xlane.xlu0 %1161 }
 0x8ba   :  { %v1166_v53 = vmul.f32 0.03125, %v1162_v61 }
 0x8bc   :  { %v1168_v6 = vadd.f32 1e-05, %v1166_v53 }
 0x8bd   :  { %v1165_v45 = vpop.xlane.xlu0 %1164 }
 0x8be   :  { %1714 = vrsqrt.f32 %v1168_v6  ;;  %v1167_v54 = vmul.f32 0.03125, %v1165_v45 }
 0x8c0   :  { %v1169_v55 = vadd.f32 1e-05, %v1167_v54 }
 0x8c2   :  { %1716 = vrsqrt.f32 %v1169_v55 }
 0x8c8   :  { %v1715_v59 = vpop.eup %1714 }
 0x8c9   :  { %v1172_v63 = vmul.f32 %v1715_v59, %v1156_v44 }
 0x8cb   :  { %v1178_v4 = vmul.f32 %v1177_v60, %v1172_v63 }
 0x8cc   :  { %v1717_v3 = vpop.eup %1716 }
 0x8cd   :  { %v1173_v7 = vmul.f32 %v1717_v3, %v1157_v46  ;;  %v1184_v10 = vadd.f32 %v1183_v8, %v1178_v4 }
 0x8cf   :  { %v1179_v9 = vmul.f32 %v1177_v60, %v1173_v7 }
 0x8d1   :  { %v1185_v11 = vadd.f32 %v1183_v8, %v1179_v9 }
 0x8d3   :  { %v1186_v12 = vpack.c.bf16 %v1185_v11, %v1184_v10 }
 0x8d5   :  { %1609 = vmatmul.mubr.msk.bf16.vlgmr.msra.gmra.mrb[36].mxu0 %vm42_vm0, %v1186_v12 }
 0x9a8   :  { %v1244_v56 = vpop.f32.mrb[36].mxu0 }
 0x9a9   :  { %v1245_v48 = vadd.f32 %v1244_v56, %v1194_v18  ;;  %v1610_v57 = vpop.f32.mrb[37].mxu0 }
 0x9aa   :  { %v1247_v19 = vpop.f32.mrb[38].mxu0 }
 0x9ab   :  { %v1253_v20 = vmul.f32 0.70710677, %v1245_v48  ;;  %v1248_v21 = vadd.f32 %v1247_v19, %v1194_v18  ;;  %v1611_v22 = vpop.f32.mrb[39].mxu0  ;;  %v1251_v18 = vmul.f32 0.5, %v1245_v48 }
 0x9ad   :  { %v1439_v23 = vclamps-f32 %v1253_v20, 4.0  ;;  %v1254_v25 = vmul.f32 0.70710677, %v1248_v21  ;;  %v1252_v56 = vmul.f32 0.5, %v1248_v21 }
 0x9af   :  { %v1259_v27 = vmul.f32 %v1439_v23, %v1439_v23  ;;  %v1440_v15 = vclamps-f32 %v1254_v25, 4.0  ;;  %v1322_v25 = vsub.s32 3, %v1865_v24 }
 0x9b1   :  { %v1261_v28 = vmul.f32 -2.7261424e-10, %v1259_v27  ;;  %v1285_v29 = vmul.f32 -1.45660715e-05, %v1259_v27  ;;  %v1260_v30 = vmul.f32 %v1440_v15, %v1440_v15 }
 0x9b3   :  { %v1263_v31 = vadd.f32 2.7706815e-08, %v1261_v28  ;;  %v1287_v62 = vadd.f32 -0.00021337405, %v1285_v29  ;;  %v1262_v32 = vmul.f32 -2.7261424e-10, %v1260_v30 }
 0x9b4   :  { %v1286_v33 = vmul.f32 -1.45660715e-05, %v1260_v30 }
 0x9b5   :  { %v1265_v34 = vmul.f32 %v1263_v31, %v1259_v27  ;;  %v1289_v36 = vmul.f32 %v1287_v62, %v1259_v27  ;;  %v1264_v37 = vadd.f32 2.7706815e-08, %v1262_v32 }
 0x9b6   :  { %v1288_v39 = vadd.f32 -0.00021337405, %v1286_v33 }
 0x9b7   :  { %v1267_v40 = vadd.f32 -2.101024e-06, %v1265_v34  ;;  %v1291_v41 = vadd.f32 -0.001682827, %v1289_v36  ;;  %v1266_v42 = vmul.f32 %v1264_v37, %v1260_v30 }
 0x9b8   :  { %v1290_v43 = vmul.f32 %v1288_v39, %v1260_v30 }
 0x9b9   :  { %v1269_v44 = vmul.f32 %v1267_v40, %v1259_v27  ;;  %v1293_v0 = vmul.f32 %v1291_v41, %v1259_v27  ;;  %v1268_v46 = vadd.f32 -2.101024e-06, %v1266_v42 }
 0x9ba   :  { %v1292_v47 = vadd.f32 -0.001682827, %v1290_v43 }
 0x9bb   :  { %v1271_v1 = vadd.f32 -5.6925062e-05, %v1269_v44  ;;  %v1295_v49 = vadd.f32 -0.0073733293, %v1293_v0  ;;  %v1270_v50 = vmul.f32 %v1268_v46, %v1260_v30 }
 0x9bc   :  { %v1294_v51 = vmul.f32 %v1292_v47, %v1260_v30 }
 0x9bd   :  { %v1273_v52 = vmul.f32 %v1271_v1, %v1259_v27  ;;  %v1297_v61 = vmul.f32 %v1295_v49, %v1259_v27  ;;  %v1272_v53 = vadd.f32 -5.6925062e-05, %v1270_v50 }
 0x9be   :  { %v1296_v6 = vadd.f32 -0.0073733293, %v1294_v51 }
 0x9bf   :  { %v1275_v45 = vadd.f32 -0.00073499064, %v1273_v52  ;;  %v1299_v54 = vadd.f32 -0.014264739, %v1297_v61  ;;  %v1274_v55 = vmul.f32 %v1272_v53, %v1260_v30 }
 0x9c0   :  { %v1298_v58 = vmul.f32 %v1296_v6, %v1260_v30 }
 0x9c1   :  { %v1277_v59 = vmul.f32 %v1275_v45, %v1259_v27  ;;  %1718 = vrcp.f32 %v1299_v54  ;;  %v1276_v60 = vadd.f32 -0.00073499064, %v1274_v55 }
 0x9c2   :  { %v1300_v63 = vadd.f32 -0.014264739, %v1298_v58 }
 0x9c3   :  { %v1279_v2 = vadd.f32 -0.0029546, %v1277_v59  ;;  %v1278_v3 = vmul.f32 %v1276_v60, %v1260_v30 }
 0x9c4   :  { %1720 = vrcp.f32 %v1300_v63 }
 0x9c5   :  { %v1281_v4 = vmul.f32 %v1279_v2, %v1259_v27  ;;  %v1280_v7 = vadd.f32 -0.0029546, %v1278_v3  ;;  %v1323_v27 = vrot.slane %v1871_v26, %v1322_v25 }
 0x9c7   :  { %v1283_v8 = vadd.f32 -0.016096033, %v1281_v4  ;;  %v1282_v9 = vmul.f32 %v1280_v7, %v1260_v30 }
 0x9c9   :  { %v1301_v10 = vmul.f32 %v1439_v23, %v1283_v8  ;;  %v1284_v11 = vadd.f32 -0.016096033, %v1282_v9 }
 0x9cb   :  { %v1719_v12 = vpop.eup %1718  ;;  %v1302_v13 = vmul.f32 %v1440_v15, %v1284_v11 }
 0x9cc   :  { %v1304_v14 = vmul.f32 %v1719_v12, %v1301_v10 }
 0x9ce   :  { %v1721_v16 = vpop.eup %1720  ;;  %v1307_v5 = vadd.f32 1.0, %v1304_v14 }
 0x9cf   :  { %v1306_v17 = vmul.f32 %v1721_v16, %v1302_v13 }
 0x9d0   :  { %v1309_v19 = vmul.f32 %v1307_v5, %v1251_v18 }
 0x9d1   :  { %v1308_v57 = vadd.f32 1.0, %v1306_v17 }
 0x9d3   :  { %v1310_v20 = vmul.f32 %v1308_v57, %v1252_v56 }
 0x9d5   :  { %v1311_v22 = vpack.c.bf16 %v1310_v20, %v1309_v19 }
 0x9d7   :  { %1621 = vmatmul.mubr.msk.bf16.vlgmr.msra.gmra.mrb[36].mxu1 %vm1348_vm6, %v1311_v22 }
 0xaaa   :  { %v1386_v23 = vpop.f32.mrb[36].mxu1 }
 0xaab   :  { %v1387_v28 = vadd.f32 %v1386_v23, %v1323_v27  ;;  %v1622_v29 = vpop.f32.mrb[37].mxu1 }
 0xaac   :  { %v1389_v15 = vpop.f32.mrb[38].mxu1 }
 0xaad   :  { %v1393_v30 = vadd.f32 %v1387_v28, %v2081_v35  ;;  %v1390_v48 = vadd.f32 %v1389_v15, %v1323_v27  ;;  %v1623_v21 = vpop.f32.mrb[39].mxu1 }
 0xaaf   :  { %1395 = vst.msk [vmem:[#allocation5] sm:$0xff] %vm42_vm0, %v1393_v30  ;;  %v1394_v31 = vadd.f32 %v1390_v48, %v2084_v38 }
 0xab1   :  { %1396 = vst.msk [vmem:[#allocation5 + $0x8] sm:$0xff] %vm42_vm0, %v1394_v31 }
 0xab2   :  { %1755 = shalt.err (!%p1752_p12)
}
 0xab3   :  { %s1756_s0 = scalar_lea.hbm %s2142_s6, 256 }
 0xab4   :  { %p1757_p13 = scmp.ne.s32.totalorder %s2142_s6, %s1756_s0  ;;  %p1760_p0 = scmp.lt.u32.totalorder %s1756_s0, %s2142_s6 }
 0xab6   :  { %p1762_p1 = pnand %p1760_p0, %p1757_p13 }
 0xab8   :  { %1765 = shalt.err (!%p1762_p1)
}
 0xab9   :  { %s1783_s17 = smov 128  }
 0xaba   :  { %1408 = dma.vmem_to_hbm [thread:$0]  %s1403_s11, 256, %s2142_s6, [#allocation4], %s1783_s17, %s1783_s17, %s1779_s21  }
 0xabb   :  { %1768 = dma.done.wait [#allocation4], 256  }
 0xabc   :  { %1769 = vsyncadd [#allocation4], 4294967040 }
 0xabd   :  { %1412 = vsyncpa [#allocation3], 1 }
 0xabe   :  { %1413 = vsyncpa [#allocation4], 1 }

</bundles_post_ra>
